<compile_context>
chip_gen: v7x
topology: tpu7x:2x2x1
jax: 0.10.0
libtpu: 0.0.40
codegen_flags: <defaults>
</compile_context>

<pallas_src>
import functools

import jax
import jax.numpy as jnp
from jax.experimental import pallas as pl
from jax.experimental.pallas import tpu as pltpu


# ------------------------------ small helpers -------------------------------
def _round_up(x, m):
    return (x + m - 1) // m * m


def _vmem_capacity_bytes(default=64 * 1024 * 1024):
    """Physical VMEM per core; conservative 64 MiB fallback (v7x floor)."""
    try:
        info = pltpu.get_tpu_info()
        return int(getattr(info, "vmem_capacity_bytes", default))
    except Exception:
        return default


def _vmem_limit(requested_bytes):
    cap = _vmem_capacity_bytes()
    return int(min(max(requested_bytes, 16 * 1024 * 1024), cap * 3 // 4))


# ---------------------------------------------------------------------------
# Kernel 1: in-place L2 normalization of entity rows (rows [0, n_ent)).
# The grid covers only entity rows; relation rows are never read or written
# and keep their values through the in-place alias.
# ---------------------------------------------------------------------------
def _normalize_entities_kernel(emb_ref, out_ref, *, n_ent, tile_rows):
    r0 = pl.program_id(0) * tile_rows
    x = emb_ref[...]                                      # (tile_rows, E) f32
    sq = jnp.sum(x * x, axis=1, keepdims=True)
    # torch F.normalize: x / max(||x||, 1e-12) == x * rsqrt(max(sq, 1e-24))
    normed = x * jax.lax.rsqrt(jnp.maximum(sq, 1e-24))

    @pl.when(r0 + tile_rows <= n_ent)         # tile fully inside entity block
    def _():
        out_ref[...] = normed

    @pl.when(r0 + tile_rows > n_ent)          # last tile straddles the boundary
    def _():
        rows = r0 + jax.lax.broadcasted_iota(jnp.int32, x.shape, 0)
        out_ref[...] = jnp.where(rows < n_ent, normed, x)


def normalize_entities(all_emb, n_ent, *, tile_rows=2048):
    """Row-normalize rows [0, n_ent) in place (aliased); relation rows untouched."""
    N, E = all_emb.shape
    # ~2 MiB per block, rows a multiple of 8, never more than needed for n_ent.
    budget_rows = max(8, (2 * 1024 * 1024 // max(E * 4, 1)) // 8 * 8)
    tile_rows = max(8, min(tile_rows, budget_rows, _round_up(n_ent, 8)) // 8 * 8)
    vmem_need = 4 * tile_rows * E * 4 + (2 << 20)     # in+out, double-buffered

    return pl.pallas_call(
        functools.partial(_normalize_entities_kernel,
                          n_ent=n_ent, tile_rows=tile_rows),
        grid=(pl.cdiv(n_ent, tile_rows),),            # entity rows only
        in_specs=[pl.BlockSpec((tile_rows, E), lambda i: (i, 0))],
        out_specs=pl.BlockSpec((tile_rows, E), lambda i: (i, 0)),
        out_shape=jax.ShapeDtypeStruct((N, E), all_emb.dtype),
        input_output_aliases={0: 0},                  # in-place update
        compiler_params=pltpu.CompilerParams(
            dimension_semantics=("parallel",),
            vmem_limit_bytes=_vmem_limit(vmem_need)),
    )(all_emb)


# ---------------------------------------------------------------------------
# Kernel 2: TransE scores via a +/-1 one-hot selection matmul on the MXU.
# Each tile handles 2*tb triples (first tb = positive, next tb = negative).
# ---------------------------------------------------------------------------
_NK = 512          # one-hot column-chunk width over the table rows


def _transe_score_kernel(idx_ref, ehi_ref, elo_ref, out_ref, *, tb, nk):
    # idx_ref : (2*tb, 3) int32 rows [h, n_ent + r, t]
    # ehi_ref : (n_blk, E) bf16  (high half of the f32 table)
    # elo_ref : (n_blk, E) bf16  (residual, table - hi)
    # out_ref : (2*tb, 1) f32 scores (kept in the reduce orientation)
    idx = idx_ref[...]
    h = idx[:, 0:1]
    r = idx[:, 1:2]
    t = idx[:, 2:3]
    n_rows, e_dim = ehi_ref.shape

    d = jnp.zeros((2 * tb, e_dim), jnp.float32)
    for s in range(0, n_rows, nk):           # static trip count, unrolled
        w = min(nk, n_rows - s)
        col = s + jax.lax.broadcasted_iota(jnp.int32, (2 * tb, w), 1)
        # sel entries are exactly {-1, 0, +1} -> exact in bf16.
        sel = ((col == h).astype(jnp.float32)
               + (col == r).astype(jnp.float32)
               - (col == t).astype(jnp.float32)).astype(jnp.bfloat16)
        # hi/lo two-pass matmul: native bf16 MXU path, ~f32 accurate result.
        d = (d
             + jnp.dot(sel, ehi_ref[s:s + w, :],
                       preferred_element_type=jnp.float32)
             + jnp.dot(sel, elo_ref[s:s + w, :],
                       preferred_element_type=jnp.float32))

    # Keep the reduce orientation (triples on sublanes) -> no relayout.
    out_ref[...] = -jnp.sum(d * d, axis=1, keepdims=True)


def transe_scores(pos_triples, neg_triples, emb_n, n_ent, *, tb=512):
    """pos/neg TransE scores: -||e_h + e_r - e_t||_2^2 for each triple."""
    B = pos_triples.shape[0]
    N, E = emb_n.shape

    tb = max(128, min(tb, _round_up(B, 128)))
    n_tiles = pl.cdiv(B, tb)
    b_pad = n_tiles * tb

    def pack(tr):        # (B, 3) [h, r, t] -> (b_pad, 3) int32 with rel offset
        packed = jnp.stack([tr[:, 0], tr[:, 1] + n_ent, tr[:, 2]], axis=1)
        return jnp.pad(packed.astype(jnp.int32), ((0, b_pad - B), (0, 0)))

    # Per-tile interleave: rows [b*2tb, b*2tb+tb) = pos, next tb rows = neg.
    idx = jnp.stack([pack(pos_triples).reshape(n_tiles, tb, 3),
                     pack(neg_triples).reshape(n_tiles, tb, 3)],
                    axis=1).reshape(n_tiles * 2 * tb, 3)

    cap = _vmem_capacity_bytes()
    # 2 bf16 tables, double-buffered, must leave room for blocks + temps.
    table_fits = (4 * N * E * 2) <= cap // 3
    if table_fits:
        table = emb_n
        n_blk = N
        tbl_idx_map = lambda b: (0, 0)        # invariant, resident in VMEM
        # TODO(synk): single-buffer this invariant block (pipeline_mode=
        # pl.Buffered(1)) to halve its VMEM footprint on v7x.
    else:
        # Large table: wrapper-side row gather into a per-tile compact table of
        # the 6*tb rows each tile needs; kernel-local indices become arange.
        table = jnp.take(emb_n, idx.reshape(-1), axis=0)   # (n_tiles*6*tb, E)
        idx = jnp.tile(jnp.arange(6 * tb, dtype=jnp.int32).reshape(2 * tb, 3),
                       (n_tiles, 1))
        n_blk = 6 * tb
        tbl_idx_map = lambda b: (b, 0)
        # TODO(synk): replace the XLA gather with in-kernel row DMAs
        # (pltpu.make_async_copy, deduplicated) to avoid the HBM staging copy.

    # bf16 hi/lo split of the f32 table (same total bytes as f32).
    t_hi = table.astype(jnp.bfloat16)
    t_lo = (table - t_hi.astype(jnp.float32)).astype(jnp.bfloat16)

    nk = min(_NK, _round_up(n_blk, 128))
    vmem_need = (4 * n_blk * E * 2                  # hi/lo tables, double-buffered
                 + 4 * (2 * tb) * 128 * 4           # idx + out blocks (lane pad)
                 + (2 * tb) * (nk * 8 + E * 4)      # sel/iota temps + accumulator
                 + (4 << 20))

    out = pl.pallas_call(
        functools.partial(_transe_score_kernel, tb=tb, nk=nk),
        out_shape=jax.ShapeDtypeStruct((n_tiles * 2 * tb, 1), jnp.float32),
        grid=(n_tiles,),
        in_specs=[pl.BlockSpec((2 * tb, 3), lambda b: (b, 0)),
                  pl.BlockSpec((n_blk, E), tbl_idx_map),
                  pl.BlockSpec((n_blk, E), tbl_idx_map)],
        out_specs=pl.BlockSpec((2 * tb, 1), lambda b: (b, 0)),
        compiler_params=pltpu.CompilerParams(
            dimension_semantics=("parallel",),
            vmem_limit_bytes=_vmem_limit(vmem_need)),
    )(idx, t_hi, t_lo)

    out = out.reshape(n_tiles, 2, tb)
    pos = out[:, 0, :].reshape(b_pad)[:B]
    neg = out[:, 1, :].reshape(b_pad)[:B]
    return pos, neg


def sparse_transe_forward(pos_triples, neg_triples, all_emb, n_ent):
    """SparseTransE.forward(valid=False): returns (pos_calc, neg_calc, updated_emb).

    all_emb is updated in place (aliased) like torch's weight.data; use the
    returned table afterwards.
    """
    emb_n = normalize_entities(all_emb, n_ent)
    pos, neg = transe_scores(pos_triples, neg_triples, emb_n, n_ent)
    return pos, neg, emb_n


# ------------------------- parameter / input construction -------------------
def init_all_emb(key, n_ent, n_rel, emb_size):
    """Xavier-uniform init + L2 row-normalization of entity and relation blocks,
    mirroring SparseTransE.__init__(initialize=True)."""
    k_e, k_r = jax.random.split(key)
    bound_e = jnp.sqrt(6.0 / (n_ent + emb_size))
    bound_r = jnp.sqrt(6.0 / (n_rel + emb_size))
    ent = jax.random.uniform(k_e, (n_ent, emb_size), jnp.float32,
                             minval=-bound_e, maxval=bound_e)
    rel = jax.random.uniform(k_r, (n_rel, emb_size), jnp.float32,
                             minval=-bound_r, maxval=bound_r)

    def l2norm(x):
        n = jnp.sqrt(jnp.sum(x * x, axis=1, keepdims=True))
        return x / jnp.maximum(n, 1e-12)

    return jnp.concatenate([l2norm(ent), l2norm(rel)], axis=0)


def random_triples(key, n_triples, n_ent, n_rel):
    kh, kr, kt = jax.random.split(key, 3)
    h = jax.random.randint(kh, (n_triples,), 0, n_ent)
    r = jax.random.randint(kr, (n_triples,), 0, n_rel)
    t = jax.random.randint(kt, (n_triples,), 0, n_ent)
    return jnp.stack([h, r, t], axis=1).astype(jnp.int32)


def triples_to_dense_adjacency(triples, n_ent, n_rel):
    """Dense equivalent of the sparse matrix fed to perform_spmm (reference only)."""
    B = triples.shape[0]
    N = n_ent + n_rel
    rows = jnp.arange(B)
    adj = jnp.zeros((B, N), jnp.float32)
    adj = adj.at[rows, triples[:, 0]].add(1.0)
    adj = adj.at[rows, n_ent + triples[:, 1]].add(1.0)
    adj = adj.at[rows, triples[:, 2]].add(-1.0)
    return adj


if __name__ == "__main__":
    n_ent, n_rel, emb_size = 96, 32, 128
    n_triples = 16
    N = n_ent + n_rel

    key = jax.random.PRNGKey(0)
    k_emb, k_scale, k_pos, k_neg = jax.random.split(key, 4)

    all_emb = init_all_emb(k_emb, n_ent, n_rel, emb_size)
    # Re-scale rows so the in-forward entity normalization does real work.
    all_emb = all_emb * (0.5 + jax.random.uniform(k_scale, (N, 1), jnp.float32))
    pos_triples = random_triples(k_pos, n_triples, n_ent, n_rel)
    neg_triples = random_triples(k_neg, n_triples, n_ent, n_rel)

    # Plain-JAX reference (mirrors the torch module with a dense perform_spmm).
    norms = jnp.sqrt(jnp.sum(all_emb * all_emb, axis=1, keepdims=True))
    emb_expected = all_emb / jnp.maximum(norms, 1e-12)
    emb_expected = jnp.where(jnp.arange(N)[:, None] < n_ent, emb_expected, all_emb)
    adj_pos = triples_to_dense_adjacency(pos_triples, n_ent, n_rel)
    adj_neg = triples_to_dense_adjacency(neg_triples, n_ent, n_rel)
    hp = jax.lax.Precision.HIGHEST
    pos_expected = -jnp.sum(jnp.matmul(adj_pos, emb_expected, precision=hp) ** 2, axis=1)
    neg_expected = -jnp.sum(jnp.matmul(adj_neg, emb_expected, precision=hp) ** 2, axis=1)

    pos, neg, emb_out = sparse_transe_forward(pos_triples, neg_triples, all_emb, n_ent)
    jax.block_until_ready((pos, neg, emb_out))

    assert pos.shape == (n_triples,) and neg.shape == (n_triples,)
    assert jnp.allclose(emb_out, emb_expected, atol=1e-5, rtol=1e-5)
    assert jnp.allclose(pos, pos_expected, atol=1e-4, rtol=1e-4)
    assert jnp.allclose(neg, neg_expected, atol=1e-4, rtol=1e-4)

    print("KERNEL_OK")
</pallas_src>

<mosaic_0001>
module attributes {stable_mosaic.version = 11 : i64} {
  func.func @_normalize_entities_kernel(%arg0: i32, %arg1: memref<96x128xf32, #tpu.memory_space<vmem>>, %arg2: memref<96x128xf32, #tpu.memory_space<vmem>>) attributes {dimension_semantics = [#tpu.dimension_semantics<parallel>], iteration_bounds = array<i64: 1>, scalar_prefetch = 0 : i64, scratch_operands = 0 : i64, tpu.core_type = #tpu.core_type<tc>, window_params = [{transform_indices = @transform_0, window_bounds = array<i64: 96, 128>}, {transform_indices = @transform_1, window_bounds = array<i64: 96, 128>}]} {
    %c96_i32 = arith.constant 96 : i32
    %0 = arith.muli %arg0, %c96_i32 : i32
    %c0 = arith.constant 0 : index
    %c0_0 = arith.constant 0 : index
    %1 = vector.load %arg1[%c0, %c0_0] : memref<96x128xf32, #tpu.memory_space<vmem>>, vector<96x128xf32>
    %2 = arith.mulf %1, %1 : vector<96x128xf32>
    %cst = arith.constant dense<0.000000e+00> : vector<96xf32>
    %3 = vector.multi_reduction <add>, %2, %cst [1] : vector<96x128xf32> to vector<96xf32>
    %4 = vector.shape_cast %3 : vector<96xf32> to vector<96x1xf32>
    %cst_1 = arith.constant 1.000000e-24 : f32
    %5 = vector.broadcast %cst_1 : f32 to vector<96x1xf32>
    %6 = arith.maximumf %4, %5 : vector<96x1xf32>
    %7 = math.rsqrt %6 : vector<96x1xf32>
    %8 = vector.broadcast %7 : vector<96x1xf32> to vector<96x128xf32>
    %9 = arith.mulf %1, %8 : vector<96x128xf32>
    %c96_i32_2 = arith.constant 96 : i32
    %10 = arith.addi %0, %c96_i32_2 : i32
    %c96_i32_3 = arith.constant 96 : i32
    %11 = arith.cmpi sle, %10, %c96_i32_3 : i32
    %12 = arith.extui %11 : i1 to i32
    %c0_i32 = arith.constant 0 : i32
    %13 = arith.cmpi ne, %12, %c0_i32 : i32
    scf.if %13 {
      %c0_7 = arith.constant 0 : index
      %c0_8 = arith.constant 0 : index
      %18 = vector.load %arg2[%c0_7, %c0_8] : memref<96x128xf32, #tpu.memory_space<vmem>>, vector<96x128xf32>
      tpu.vector_store %arg2[%c0_7, %c0_8], %9 {strides = array<i32>} : memref<96x128xf32, #tpu.memory_space<vmem>>, vector<96x128xf32>,
    } else {
    }
    %c96_i32_4 = arith.constant 96 : i32
    %14 = arith.addi %0, %c96_i32_4 : i32
    %c96_i32_5 = arith.constant 96 : i32
    %15 = arith.cmpi sgt, %14, %c96_i32_5 : i32
    %16 = arith.extui %15 : i1 to i32
    %c0_i32_6 = arith.constant 0 : i32
    %17 = arith.cmpi ne, %16, %c0_i32_6 : i32
    scf.if %17 {
      %18 = tpu.iota {dimensions = array<i32: 0>} : vector<96x128xi32>
      %19 = vector.broadcast %0 : i32 to vector<96x128xi32>
      %20 = arith.addi %19, %18 : vector<96x128xi32>
      %c96_i32_7 = arith.constant 96 : i32
      %21 = vector.broadcast %c96_i32_7 : i32 to vector<96x128xi32>
      %22 = arith.cmpi slt, %20, %21 : vector<96x128xi32>
      %23 = arith.select %22, %9, %1 : vector<96x128xi1>, vector<96x128xf32>
      %c0_8 = arith.constant 0 : index
      %c0_9 = arith.constant 0 : index
      %24 = vector.load %arg2[%c0_8, %c0_9] : memref<96x128xf32, #tpu.memory_space<vmem>>, vector<96x128xf32>
      tpu.vector_store %arg2[%c0_8, %c0_9], %23 {strides = array<i32>} : memref<96x128xf32, #tpu.memory_space<vmem>>, vector<96x128xf32>,
    } else {
    }
    return
  }
  func.func @transform_0(%arg0: i32) -> (i32, i32) {
    %c0_i32 = arith.constant 0 : i32
    %c0_i32_0 = arith.constant 0 : i32
    return %arg0, %c0_i32 : i32, i32
  }
  func.func @transform_1(%arg0: i32) -> (i32, i32) {
    %c0_i32 = arith.constant 0 : i32
    %c0_i32_0 = arith.constant 0 : i32
    return %arg0, %c0_i32 : i32, i32
  }
}

</mosaic_0001>

<bundles_post_ra>
// kernel: tpu_custom_call.1
= control target key start
LH: loop header
LB: loop body
LE: loop exit
PB: predicated region body
PF: predicated region fallthrough
CT: control target
= control target key end

     0   :  { %6 = vsyncpa [#allocation3], 0  ;;  %s384_s0 = inlined_call_operand.hbm [shape: f32[128,128], index: 0, kind: input, shape index: {}, may-alias: {0,1}]   ;;  %s385_s1 = inlined_call_operand.hbm [shape: f32[128,128], index: 1, kind: output, shape index: {}, may-alias: {0,1}]  }
   0x1   :  { %7 = vsyncpa [#allocation4], 0  ;;  %s284_s6 = smov [#allocation2]   ;;  %s236_s10 = scalar_lea.hbm %s384_s0, 1536 }
   0x2   :  { %s13_s7 = sshll.u32 %s284_s6, 4  ;;  %p237_p0 = scmp.ne.s32.totalorder %s384_s0, %s236_s10  ;;  %s14_s7 = int_to_ptr.vmem [resolvable:$true] %s13_s7 }
   0x3   :  { %s238_s15 = scalar_lea.hbm %s384_s0, 2048  ;;  %p240_p2 = scmp.lt.u32.totalorder %s236_s10, %s384_s0 }
   0x4   :  { %p239_p1 = scmp.lt.u32.totalorder %s238_s15, %s236_s10 }
   0x6   :  { %p241_p3 = por %p240_p2, %p239_p1 }
   0x8   :  { %p242_p4 = pnand %p241_p3, %p237_p0 }
   0xa   :  { %245 = shalt.err (!%p242_p4)
}
   0xb   :  { %s246_s18 = scalar_lea.vmem %s14_s7, 1536  ;;  %p251_p6 = scmp.lt.s32.totalorder %s14_s7, %s14_s7 }
   0xc   :  { %p247_p5 = scmp.ne.s32.totalorder %s14_s7, %s246_s18  ;;  %p252_p7 = scmp.lt.s32.totalorder %s246_s18, %s246_s18 }
   0xe   :  { %p253_p8 = por %p252_p7, %p251_p6 }
  0x10   :  { %p254_p9 = pnand %p253_p8, %p247_p5 }
  0x12   :  { %257 = shalt.err (!%p254_p9)
}
  0x13   :  { %s285_s19 = smov 128   ;;  %s286_s20 = smov 8  }
  0x14   :  { %19 = dma.hbm_to_vmem [thread:$0]  %s384_s0, 1536, %s14_s7, [#allocation3], %s285_s19, %s285_s19, %s286_s20  }
  0x15   :  { %280 = dma.done.wait [#allocation3], 1536  }
  0x16   :  { %281 = vsyncadd [#allocation3], 4294965760  ;;  %v26_v0 = vld [vmem:[#allocation2 + $0x10] sm:$0xff]  ;;  %v24_v1 = vld [vmem:[#allocation2] sm:$0xff]  ;;  %s287_s0 = smov [#allocation5]  }
  0x17   :  { %v316_v2 = vld [vmem:[#allocation2 + $0x18] sm:$0xff]  ;;  %v38_v3 = vmul.f32 %v26_v0, %v26_v0  ;;  %v36_v4 = vmul.f32 %v24_v1, %v24_v1  ;;  %v318_v5 = vld [vmem:[#allocation2 + $0x8] sm:$0xff]  ;;  %v326_v9 = vld [vmem:[#allocation2 + $0x20] sm:$0xff]  ;;  %s196_s23 = sshll.u32 %s287_s0, 4  ;;  %s197_s23 = int_to_ptr.vmem [resolvable:$true] %s196_s23 }
  0x18   :  { %v39_v6 = vmul.f32 %v316_v2, %v316_v2  ;;  %v37_v7 = vmul.f32 %v318_v5, %v318_v5  ;;  %v324_v8 = vld [vmem:[#allocation2 + $0x28] sm:$0xff]  ;;  %v40_v11 = vmul.f32 %v326_v9, %v326_v9  ;;  %v332_v12 = vld [vmem:[#allocation2 + $0x38] sm:$0xff]  ;;  %v334_v13 = vld [vmem:[#allocation2 + $0x30] sm:$0xff]  ;;  %s258_s24 = scalar_lea.vmem %s197_s23, 1536  ;;  %p263_p11 = scmp.lt.s32.totalorder %s197_s23, %s197_s23 }
  0x19   :  { %52 = vadd.xlane.f32.xlu1 %v38_v3  ;;  %48 = vadd.xlane.f32.xlu0 %v36_v4  ;;  %v41_v10 = vmul.f32 %v324_v8, %v324_v8  ;;  %v43_v14 = vmul.f32 %v332_v12, %v332_v12  ;;  %v42_v15 = vmul.f32 %v334_v13, %v334_v13  ;;  %v340_v16 = vld [vmem:[#allocation2 + $0x48] sm:$0xff]  ;;  %v342_v17 = vld [vmem:[#allocation2 + $0x40] sm:$0xff]  ;;  %v348_v20 = vld [vmem:[#allocation2 + $0x58] sm:$0xff]  ;;  %p259_p10 = scmp.ne.s32.totalorder %s197_s23, %s258_s24  ;;  %p264_p12 = scmp.lt.s32.totalorder %s258_s24, %s258_s24 }
  0x1a   :  { %v45_v18 = vmul.f32 %v340_v16, %v340_v16  ;;  %v44_v19 = vmul.f32 %v342_v17, %v342_v17  ;;  %v350_v21 = vld [vmem:[#allocation2 + $0x50] sm:$0xff]  ;;  %v47_v22 = vmul.f32 %v348_v20, %v348_v20 }
  0x1b   :  { %v46_v23 = vmul.f32 %v350_v21, %v350_v21  ;;  %p265_p13 = por %p264_p12, %p263_p11 }
  0x1d   :  { %54 = vadd.xlane.f32.xlu1 %v39_v6  ;;  %50 = vadd.xlane.f32.xlu0 %v37_v7  ;;  %p266_p0 = pnand %p265_p13, %p259_p10 }
  0x21   :  { %58 = vadd.xlane.f32.xlu1 %v41_v10  ;;  %56 = vadd.xlane.f32.xlu0 %v40_v11 }
  0x25   :  { %62 = vadd.xlane.f32.xlu1 %v43_v14  ;;  %60 = vadd.xlane.f32.xlu0 %v42_v15 }
  0x29   :  { %66 = vadd.xlane.f32.xlu1 %v45_v18  ;;  %64 = vadd.xlane.f32.xlu0 %v44_v19 }
  0x2d   :  { %70 = vadd.xlane.f32.xlu1 %v47_v22  ;;  %68 = vadd.xlane.f32.xlu0 %v46_v23 }
  0xa6   :  { %v53_v24 = vpop.xlane.xlu1 %52  ;;  %v49_v25 = vpop.xlane.xlu0 %48 }
  0xa7   :  { %v74_v26 = vmax.f32 %v53_v24, 1e-24  ;;  %v72_v27 = vmax.f32 %v49_v25, 1e-24 }
  0xa9   :  { %212 = vrsqrt.f32 %v74_v26 }
  0xaa   :  { %214 = vrsqrt.f32 %v72_v27  ;;  %v55_v28 = vpop.xlane.xlu1 %54  ;;  %v51_v29 = vpop.xlane.xlu0 %50 }
  0xab   :  { %v75_v30 = vmax.f32 %v55_v28, 1e-24  ;;  %v73_v31 = vmax.f32 %v51_v29, 1e-24 }
  0xad   :  { %216 = vrsqrt.f32 %v75_v30 }
  0xae   :  { %218 = vrsqrt.f32 %v73_v31  ;;  %v59_v32 = vpop.xlane.xlu1 %58  ;;  %v57_v33 = vpop.xlane.xlu0 %56 }
  0xaf   :  { %v77_v34 = vmax.f32 %v59_v32, 1e-24  ;;  %v76_v35 = vmax.f32 %v57_v33, 1e-24 }
  0xb1   :  { %220 = vrsqrt.f32 %v77_v34 }
  0xb2   :  { %222 = vrsqrt.f32 %v76_v35  ;;  %v63_v36 = vpop.xlane.xlu1 %62  ;;  %v61_v37 = vpop.xlane.xlu0 %60 }
  0xb3   :  { %v213_v38 = vpop.eup %212  ;;  %v79_v39 = vmax.f32 %v63_v36, 1e-24  ;;  %v78_v40 = vmax.f32 %v61_v37, 1e-24 }
  0xb4   :  { %v215_v41 = vpop.eup %214  ;;  %v98_v42 = vmul.f32 %v213_v38, %v26_v0 }
  0xb5   :  { %v96_v43 = vmul.f32 %v215_v41, %v24_v1  ;;  %224 = vrsqrt.f32 %v79_v39 }
  0xb6   :  { %115 = vst [vmem:[#allocation5 + $0x10] sm:$0xff] %v98_v42  ;;  %226 = vrsqrt.f32 %v78_v40  ;;  %v67_v44 = vpop.xlane.xlu1 %66  ;;  %v65_v45 = vpop.xlane.xlu0 %64 }
  0xb7   :  { %v217_v46 = vpop.eup %216  ;;  %113 = vst [vmem:[#allocation5] sm:$0xff] %v96_v43  ;;  %v81_v47 = vmax.f32 %v67_v44, 1e-24  ;;  %v80_v48 = vmax.f32 %v65_v45, 1e-24 }
  0xb8   :  { %v219_v49 = vpop.eup %218  ;;  %v99_v50 = vmul.f32 %v217_v46, %v316_v2 }
  0xb9   :  { %v97_v51 = vmul.f32 %v219_v49, %v318_v5  ;;  %228 = vrsqrt.f32 %v81_v47 }
  0xba   :  { %116 = vst [vmem:[#allocation5 + $0x18] sm:$0xff] %v99_v50  ;;  %230 = vrsqrt.f32 %v80_v48  ;;  %v71_v52 = vpop.xlane.xlu1 %70  ;;  %v69_v53 = vpop.xlane.xlu0 %68 }
  0xbb   :  { %v221_v54 = vpop.eup %220  ;;  %114 = vst [vmem:[#allocation5 + $0x8] sm:$0xff] %v97_v51  ;;  %v83_v55 = vmax.f32 %v71_v52, 1e-24  ;;  %v82_v56 = vmax.f32 %v69_v53, 1e-24 }
  0xbc   :  { %v223_v57 = vpop.eup %222  ;;  %v101_v58 = vmul.f32 %v221_v54, %v324_v8 }
  0xbd   :  { %v100_v59 = vmul.f32 %v223_v57, %v326_v9  ;;  %232 = vrsqrt.f32 %v83_v55 }
  0xbe   :  { %118 = vst [vmem:[#allocation5 + $0x28] sm:$0xff] %v101_v58  ;;  %234 = vrsqrt.f32 %v82_v56 }
  0xbf   :  { %v225_v60 = vpop.eup %224  ;;  %117 = vst [vmem:[#allocation5 + $0x20] sm:$0xff] %v100_v59 }
  0xc0   :  { %v227_v61 = vpop.eup %226  ;;  %v103_v62 = vmul.f32 %v225_v60, %v332_v12 }
  0xc1   :  { %v102_v63 = vmul.f32 %v227_v61, %v334_v13 }
  0xc2   :  { %120 = vst [vmem:[#allocation5 + $0x38] sm:$0xff] %v103_v62 }
  0xc3   :  { %v229_v0 = vpop.eup %228  ;;  %119 = vst [vmem:[#allocation5 + $0x30] sm:$0xff] %v102_v63 }
  0xc4   :  { %v231_v1 = vpop.eup %230  ;;  %v105_v2 = vmul.f32 %v229_v0, %v340_v16 }
  0xc5   :  { %v104_v3 = vmul.f32 %v231_v1, %v342_v17 }
  0xc6   :  { %122 = vst [vmem:[#allocation5 + $0x48] sm:$0xff] %v105_v2 }
  0xc7   :  { %v233_v4 = vpop.eup %232  ;;  %121 = vst [vmem:[#allocation5 + $0x40] sm:$0xff] %v104_v3 }
  0xc8   :  { %v235_v5 = vpop.eup %234  ;;  %v107_v6 = vmul.f32 %v233_v4, %v348_v20 }
  0xc9   :  { %v106_v7 = vmul.f32 %v235_v5, %v350_v21 }
  0xca   :  { %124 = vst [vmem:[#allocation5 + $0x58] sm:$0xff] %v107_v6 }
  0xcb   :  { %123 = vst [vmem:[#allocation5 + $0x50] sm:$0xff] %v106_v7 }
  0xcc   :  { %269 = shalt.err (!%p266_p0)
}
  0xcd   :  { %s270_s27 = scalar_lea.hbm %s385_s1, 1536  ;;  %s272_s3 = scalar_lea.hbm %s385_s1, 2048 }
  0xce   :  { %p271_p1 = scmp.ne.s32.totalorder %s385_s1, %s270_s27  ;;  %p273_p2 = scmp.lt.u32.totalorder %s272_s3, %s270_s27 }
  0xcf   :  { %p274_p3 = scmp.lt.u32.totalorder %s270_s27, %s385_s1 }
  0xd1   :  { %p275_p4 = por %p274_p3, %p273_p2 }
  0xd3   :  { %p276_p5 = pnand %p275_p4, %p271_p1 }
  0xd5   :  { %279 = shalt.err (!%p276_p5)
}
  0xd6   :  { %202 = dma.vmem_to_hbm [thread:$0]  %s197_s23, 1536, %s385_s1, [#allocation4], %s285_s19, %s285_s19, %s286_s20  }
  0xd7   :  { %282 = dma.done.wait [#allocation4], 1536  }
  0xd8   :  { %283 = vsyncadd [#allocation4], 4294965760 }
  0xd9   :  { %206 = vsyncpa [#allocation3], 1 }
  0xda   :  { %207 = vsyncpa [#allocation4], 1 }

</bundles_post_ra>
